<compile_context>
chip_gen: v6e
topology: v6e:2x2x1
jax: 0.10.0
libtpu: 0.0.40
codegen_flags: <defaults>
</compile_context>

<pallas_src>
import math
import jax
import jax.numpy as jnp
from jax.experimental import pallas as pl
from jax.experimental.pallas import tpu as pltpu

LANE = 128
BF16_SUBLANE = 16  # bf16 packs 16 rows per sublane group


def _round_up(x, m):
    return (x + m - 1) // m * m


def actor_kernel(x_ref, w1_ref, b1_ref, w2_ref, b2_ref,
                 w3_ref, b3_ref, w4_ref, b4_ref, out_ref):
    # Layer 1: Linear + ReLU (bf16 operands, f32 MXU accumulation).
    h = jnp.dot(x_ref[...], w1_ref[...], preferred_element_type=jnp.float32)
    h = jnp.maximum(h + b1_ref[...], 0.0).astype(jnp.bfloat16)

    # Layer 2: Linear + ReLU
    h = jnp.dot(h, w2_ref[...], preferred_element_type=jnp.float32)
    h = jnp.maximum(h + b2_ref[...], 0.0).astype(jnp.bfloat16)

    # Layer 3: Linear + ReLU
    h = jnp.dot(h, w3_ref[...], preferred_element_type=jnp.float32)
    h = jnp.maximum(h + b3_ref[...], 0.0).astype(jnp.bfloat16)

    # Layer 4: Linear + Tanh (output padded to 128 lanes; sliced in wrapper).
    h = jnp.dot(h, w4_ref[...], preferred_element_type=jnp.float32) + b4_ref[...]
    out_ref[...] = jnp.tanh(h)


def actor_forward(state, params, action_size, batch_tile=128):
    """state: (B, state_size) f32.  params: 4 x (W bf16 (in_pad, out_pad), b f32 (1, out_pad))."""
    (w1, b1), (w2, b2), (w3, b3), (w4, b4) = params
    B, S = state.shape
    in_pad = w1.shape[0]
    out_pad = w4.shape[1]

    # Pad batch to a multiple of the batch tile (>= 8 sublanes), pad features
    # to the padded fan-in of layer 1, and pre-cast activations to bf16.
    tb = min(batch_tile, _round_up(B, 8))
    B_pad = _round_up(B, tb)
    x = jnp.zeros((B_pad, in_pad), jnp.float32).at[:B, :S].set(state)
    x = x.astype(jnp.bfloat16)

    n_tiles = B_pad // tb

    def weight_spec(shape):
        return pl.BlockSpec(shape, lambda i: (0, 0))

    in_specs = [
        pl.BlockSpec((tb, in_pad), lambda i: (i, 0)),
        weight_spec(w1.shape), weight_spec(b1.shape),
        weight_spec(w2.shape), weight_spec(b2.shape),
        weight_spec(w3.shape), weight_spec(b3.shape),
        weight_spec(w4.shape), weight_spec(b4.shape),
    ]
    out_spec = pl.BlockSpec((tb, out_pad), lambda i: (i, 0))

    out = pl.pallas_call(
        actor_kernel,
        out_shape=jax.ShapeDtypeStruct((B_pad, out_pad), jnp.float32),
        grid=(n_tiles,),
        in_specs=in_specs,
        out_specs=out_spec,
        compiler_params=pltpu.CompilerParams(
            dimension_semantics=("parallel",)),
    )(x, w1, b1, w2, b2, w3, b3, w4, b4)
    return out[:B, :action_size]


def init_actor_params(key, state_size, action_size):
    """Shapes/semantics match the PyTorch module.

    Weights: Xavier-uniform with gain = calculate_gain('relu') = sqrt(2),
             computed with the TRUE fan_in/fan_out, then zero-padded to
             TPU/bf16-friendly shapes and stored as bfloat16.
    Biases:  PyTorch nn.Linear default U(-1/sqrt(fan_in), 1/sqrt(fan_in)), f32.
    (RNG streams differ from torch.manual_seed, but semantics/shapes match.)
    """
    dims = [state_size, 512, 256, 128, action_size]
    pads = [_round_up(state_size, BF16_SUBLANE), 512, 256, 128,
            _round_up(action_size, LANE)]
    gain = math.sqrt(2.0)
    params = []
    for i in range(4):
        fan_in, fan_out = dims[i], dims[i + 1]
        pad_in, pad_out = pads[i], pads[i + 1]
        key, kw, kb = jax.random.split(key, 3)
        w_bound = gain * math.sqrt(6.0 / (fan_in + fan_out))
        w = jax.random.uniform(kw, (fan_in, fan_out), jnp.float32, -w_bound, w_bound)
        b_bound = 1.0 / math.sqrt(fan_in)
        b = jax.random.uniform(kb, (1, fan_out), jnp.float32, -b_bound, b_bound)
        # Zero-padded rows/cols contribute nothing to the result.
        w_p = jnp.zeros((pad_in, pad_out), jnp.float32).at[:fan_in, :fan_out].set(w)
        b_p = jnp.zeros((1, pad_out), jnp.float32).at[:, :fan_out].set(b)
        params.append((w_p.astype(jnp.bfloat16), b_p))
    return params


def actor_reference(state, params, action_size):
    """Pure-JAX reference with the same numerics (bf16 operands, f32 accumulation)."""
    in_pad = params[0][0].shape[0]
    h = jnp.pad(state, ((0, 0), (0, in_pad - state.shape[1])))
    for i, (w, b) in enumerate(params):
        h = jnp.dot(h.astype(jnp.bfloat16), w, preferred_element_type=jnp.float32) + b
        h = jnp.maximum(h, 0.0) if i < 3 else jnp.tanh(h)
    return h[:, :action_size]


if __name__ == "__main__":
    state_size = 33   # reacher-style observation dim
    action_size = 4   # reacher action dim
    batch = 8

    key = jax.random.PRNGKey(0)
    key, kx = jax.random.split(key)
    state = jax.random.normal(kx, (batch, state_size), jnp.float32)

    params = init_actor_params(key, state_size, action_size)

    out = actor_forward(state, params, action_size)
    out = jax.block_until_ready(out)

    ref = actor_reference(state, params, action_size)
    assert out.shape == (batch, action_size)
    assert jnp.allclose(out, ref, atol=2e-2, rtol=2e-2), "mismatch vs JAX reference"
    assert bool(jnp.all(jnp.abs(out) <= 1.0)), "tanh output must be in [-1, 1]"

    print("KERNEL_OK")
</pallas_src>

<mosaic_0001>
module attributes {stable_mosaic.version = 11 : i64} {
  func.func @actor_kernel(%arg0: i32, %arg1: memref<8x48xbf16, #tpu.memory_space<vmem>>, %arg2: memref<48x512xbf16, #tpu.memory_space<vmem>>, %arg3: memref<1x512xf32, #tpu.memory_space<vmem>>, %arg4: memref<512x256xbf16, #tpu.memory_space<vmem>>, %arg5: memref<1x256xf32, #tpu.memory_space<vmem>>, %arg6: memref<256x128xbf16, #tpu.memory_space<vmem>>, %arg7: memref<1x128xf32, #tpu.memory_space<vmem>>, %arg8: memref<128x128xbf16, #tpu.memory_space<vmem>>, %arg9: memref<1x128xf32, #tpu.memory_space<vmem>>, %arg10: memref<8x128xf32, #tpu.memory_space<vmem>>) attributes {dimension_semantics = [#tpu.dimension_semantics<parallel>], iteration_bounds = array<i64: 1>, scalar_prefetch = 0 : i64, scratch_operands = 0 : i64, tpu.core_type = #tpu.core_type<tc>, window_params = [{transform_indices = @transform_0, window_bounds = array<i64: 8, 48>}, {pipeline_mode = #tpu.pipeline_mode<synchronous>, transform_indices = @transform_1, window_bounds = array<i64: 48, 512>}, {pipeline_mode = #tpu.pipeline_mode<synchronous>, transform_indices = @transform_2, window_bounds = array<i64: 1, 512>}, {pipeline_mode = #tpu.pipeline_mode<synchronous>, transform_indices = @transform_3, window_bounds = array<i64: 512, 256>}, {pipeline_mode = #tpu.pipeline_mode<synchronous>, transform_indices = @transform_4, window_bounds = array<i64: 1, 256>}, {pipeline_mode = #tpu.pipeline_mode<synchronous>, transform_indices = @transform_5, window_bounds = array<i64: 256, 128>}, {pipeline_mode = #tpu.pipeline_mode<synchronous>, transform_indices = @transform_6, window_bounds = array<i64: 1, 128>}, {pipeline_mode = #tpu.pipeline_mode<synchronous>, transform_indices = @transform_7, window_bounds = array<i64: 128, 128>}, {pipeline_mode = #tpu.pipeline_mode<synchronous>, transform_indices = @transform_8, window_bounds = array<i64: 1, 128>}, {transform_indices = @transform_9, window_bounds = array<i64: 8, 128>}]} {
    %c0 = arith.constant 0 : index
    %c0_0 = arith.constant 0 : index
    %0 = vector.load %arg1[%c0, %c0_0] : memref<8x48xbf16, #tpu.memory_space<vmem>>, vector<8x48xbf16>
    %c0_1 = arith.constant 0 : index
    %c0_2 = arith.constant 0 : index
    %1 = vector.load %arg2[%c0_1, %c0_2] : memref<48x512xbf16, #tpu.memory_space<vmem>>, vector<48x512xbf16>
    %cst = arith.constant dense<0.000000e+00> : vector<8x512xf32>
    %2 = tpu.matmul %0, %1, %cst {dimension_numbers = #tpu.dot_dimension_numbers<[1], [0], [0], [1], [0, 0, 1, 1], [], []>} : vector<8x48xbf16>, vector<48x512xbf16>, vector<8x512xf32> -> vector<8x512xf32>
    %c0_3 = arith.constant 0 : index
    %c0_4 = arith.constant 0 : index
    %3 = vector.load %arg3[%c0_3, %c0_4] : memref<1x512xf32, #tpu.memory_space<vmem>>, vector<1x512xf32>
    %4 = vector.broadcast %3 : vector<1x512xf32> to vector<8x512xf32>
    %5 = arith.addf %2, %4 : vector<8x512xf32>
    %cst_5 = arith.constant 0.000000e+00 : f32
    %6 = vector.broadcast %cst_5 : f32 to vector<8x512xf32>
    %7 = arith.maximumf %5, %6 : vector<8x512xf32>
    %8 = arith.truncf %7 : vector<8x512xf32> to vector<8x512xbf16>
    %c0_6 = arith.constant 0 : index
    %c0_7 = arith.constant 0 : index
    %9 = vector.load %arg4[%c0_6, %c0_7] : memref<512x256xbf16, #tpu.memory_space<vmem>>, vector<512x256xbf16>
    %cst_8 = arith.constant dense<0.000000e+00> : vector<8x256xf32>
    %10 = tpu.matmul %8, %9, %cst_8 {dimension_numbers = #tpu.dot_dimension_numbers<[1], [0], [0], [1], [0, 0, 1, 1], [], []>} : vector<8x512xbf16>, vector<512x256xbf16>, vector<8x256xf32> -> vector<8x256xf32>
    %c0_9 = arith.constant 0 : index
    %c0_10 = arith.constant 0 : index
    %11 = vector.load %arg5[%c0_9, %c0_10] : memref<1x256xf32, #tpu.memory_space<vmem>>, vector<1x256xf32>
    %12 = vector.broadcast %11 : vector<1x256xf32> to vector<8x256xf32>
    %13 = arith.addf %10, %12 : vector<8x256xf32>
    %cst_11 = arith.constant 0.000000e+00 : f32
    %14 = vector.broadcast %cst_11 : f32 to vector<8x256xf32>
    %15 = arith.maximumf %13, %14 : vector<8x256xf32>
    %16 = arith.truncf %15 : vector<8x256xf32> to vector<8x256xbf16>
    %c0_12 = arith.constant 0 : index
    %c0_13 = arith.constant 0 : index
    %17 = vector.load %arg6[%c0_12, %c0_13] : memref<256x128xbf16, #tpu.memory_space<vmem>>, vector<256x128xbf16>
    %cst_14 = arith.constant dense<0.000000e+00> : vector<8x128xf32>
    %18 = tpu.matmul %16, %17, %cst_14 {dimension_numbers = #tpu.dot_dimension_numbers<[1], [0], [0], [1], [0, 0, 1, 1], [], []>} : vector<8x256xbf16>, vector<256x128xbf16>, vector<8x128xf32> -> vector<8x128xf32>
    %c0_15 = arith.constant 0 : index
    %c0_16 = arith.constant 0 : index
    %19 = vector.load %arg7[%c0_15, %c0_16] : memref<1x128xf32, #tpu.memory_space<vmem>>, vector<1x128xf32>
    %20 = vector.broadcast %19 : vector<1x128xf32> to vector<8x128xf32>
    %21 = arith.addf %18, %20 : vector<8x128xf32>
    %cst_17 = arith.constant 0.000000e+00 : f32
    %22 = vector.broadcast %cst_17 : f32 to vector<8x128xf32>
    %23 = arith.maximumf %21, %22 : vector<8x128xf32>
    %24 = arith.truncf %23 : vector<8x128xf32> to vector<8x128xbf16>
    %c0_18 = arith.constant 0 : index
    %c0_19 = arith.constant 0 : index
    %25 = vector.load %arg8[%c0_18, %c0_19] : memref<128x128xbf16, #tpu.memory_space<vmem>>, vector<128x128xbf16>
    %cst_20 = arith.constant dense<0.000000e+00> : vector<8x128xf32>
    %26 = tpu.matmul %24, %25, %cst_20 {dimension_numbers = #tpu.dot_dimension_numbers<[1], [0], [0], [1], [0, 0, 1, 1], [], []>} : vector<8x128xbf16>, vector<128x128xbf16>, vector<8x128xf32> -> vector<8x128xf32>
    %c0_21 = arith.constant 0 : index
    %c0_22 = arith.constant 0 : index
    %27 = vector.load %arg9[%c0_21, %c0_22] : memref<1x128xf32, #tpu.memory_space<vmem>>, vector<1x128xf32>
    %28 = vector.broadcast %27 : vector<1x128xf32> to vector<8x128xf32>
    %29 = arith.addf %26, %28 : vector<8x128xf32>
    %30 = math.tanh %29 : vector<8x128xf32>
    %c0_23 = arith.constant 0 : index
    %c0_24 = arith.constant 0 : index
    %31 = vector.load %arg10[%c0_23, %c0_24] : memref<8x128xf32, #tpu.memory_space<vmem>>, vector<8x128xf32>
    tpu.vector_store %arg10[%c0_23, %c0_24], %30 {strides = array<i32>} : memref<8x128xf32, #tpu.memory_space<vmem>>, vector<8x128xf32>,
    return
  }
  func.func @transform_0(%arg0: i32) -> (i32, i32) {
    %c0_i32 = arith.constant 0 : i32
    %c0_i32_0 = arith.constant 0 : i32
    return %arg0, %c0_i32 : i32, i32
  }
  func.func @transform_1(%arg0: i32) -> (i32, i32) {
    %c0_i32 = arith.constant 0 : i32
    %c0_i32_0 = arith.constant 0 : i32
    %c0_i32_1 = arith.constant 0 : i32
    return %c0_i32, %c0_i32_0 : i32, i32
  }
  func.func @transform_2(%arg0: i32) -> (i32, i32) {
    %c0_i32 = arith.constant 0 : i32
    %c0_i32_0 = arith.constant 0 : i32
    %c0_i32_1 = arith.constant 0 : i32
    return %c0_i32, %c0_i32_0 : i32, i32
  }
  func.func @transform_3(%arg0: i32) -> (i32, i32) {
    %c0_i32 = arith.constant 0 : i32
    %c0_i32_0 = arith.constant 0 : i32
    %c0_i32_1 = arith.constant 0 : i32
    return %c0_i32, %c0_i32_0 : i32, i32
  }
  func.func @transform_4(%arg0: i32) -> (i32, i32) {
    %c0_i32 = arith.constant 0 : i32
    %c0_i32_0 = arith.constant 0 : i32
    %c0_i32_1 = arith.constant 0 : i32
    return %c0_i32, %c0_i32_0 : i32, i32
  }
  func.func @transform_5(%arg0: i32) -> (i32, i32) {
    %c0_i32 = arith.constant 0 : i32
    %c0_i32_0 = arith.constant 0 : i32
    %c0_i32_1 = arith.constant 0 : i32
    return %c0_i32, %c0_i32_0 : i32, i32
  }
  func.func @transform_6(%arg0: i32) -> (i32, i32) {
    %c0_i32 = arith.constant 0 : i32
    %c0_i32_0 = arith.constant 0 : i32
    %c0_i32_1 = arith.constant 0 : i32
    return %c0_i32, %c0_i32_0 : i32, i32
  }
  func.func @transform_7(%arg0: i32) -> (i32, i32) {
    %c0_i32 = arith.constant 0 : i32
    %c0_i32_0 = arith.constant 0 : i32
    %c0_i32_1 = arith.constant 0 : i32
    return %c0_i32, %c0_i32_0 : i32, i32
  }
  func.func @transform_8(%arg0: i32) -> (i32, i32) {
    %c0_i32 = arith.constant 0 : i32
    %c0_i32_0 = arith.constant 0 : i32
    %c0_i32_1 = arith.constant 0 : i32
    return %c0_i32, %c0_i32_0 : i32, i32
  }
  func.func @transform_9(%arg0: i32) -> (i32, i32) {
    %c0_i32 = arith.constant 0 : i32
    %c0_i32_0 = arith.constant 0 : i32
    return %arg0, %c0_i32 : i32, i32
  }
}

</mosaic_0001>

<bundles_post_ra>
// kernel: tpu_custom_call.1
= control target key start
LH: loop header
LB: loop body
LE: loop exit
PB: predicated region body
PF: predicated region fallthrough
CT: control target
= control target key end

     0   :  { %14 = vsyncpa [#allocation3], 0  ;;  %s1662_s0 = inlined_call_operand.hbm [shape: bf16[8,48], index: 0, kind: input, shape index: {}]   ;;  %s1663_s1 = inlined_call_operand.hbm [shape: bf16[48,512], index: 1, kind: input, shape index: {}]   ;;  %s1664_s2 = inlined_call_operand.hbm [shape: f32[1,512], index: 2, kind: input, shape index: {}]   ;;  %s1665_s3 = inlined_call_operand.hbm [shape: bf16[512,256], index: 3, kind: input, shape index: {}]   ;;  %s1666_s4 = inlined_call_operand.vmem [shape: f32[1,256], index: 4, kind: input, shape index: {}]   ;;  %s1667_s5 = inlined_call_operand.hbm [shape: bf16[256,128], index: 5, kind: input, shape index: {}]   ;;  %s1668_s6 = inlined_call_operand.vmem [shape: f32[1,128], index: 6, kind: input, shape index: {}]   ;;  %s1669_s7 = inlined_call_operand.hbm [shape: bf16[128,128], index: 7, kind: input, shape index: {}]   ;;  %s1670_s8 = inlined_call_operand.vmem [shape: f32[1,128], index: 8, kind: input, shape index: {}]   ;;  %s1671_s9 = inlined_call_operand.hbm [shape: f32[8,128], index: 9, kind: output, shape index: {}]  }
   0x1   :  { %15 = vsyncpa [#allocation6], 0 }
   0x2   :  { %16 = vsyncpa [#allocation9], 0 }
   0x3   :  { %17 = vsyncpa [#allocation12], 0 }
   0x4   :  { %18 = vsyncpa [#allocation4], 0  ;;  %s1552_s30 = smov [#allocation5]  }
   0x5   :  { %s34_s10 = sshll.u32 %s1552_s30, 4  ;;  %s35_s10 = int_to_ptr.vmem [resolvable:$true] %s34_s10 }
   0x6   :  { %s1410_s11 = scalar_lea.vmem %s35_s10, 1536  ;;  %p1415_p1 = scmp.lt.s32.totalorder %s35_s10, %s35_s10 }
   0x7   :  { %p1411_p0 = scmp.ne.s32.totalorder %s35_s10, %s1410_s11  ;;  %p1416_p2 = scmp.lt.s32.totalorder %s1410_s11, %s1410_s11 }
   0x9   :  { %p1417_p3 = por %p1416_p2, %p1415_p1 }
   0xb   :  { %p1418_p4 = pnand %p1417_p3, %p1411_p0 }
   0xd   :  { %1421 = shalt.err (!%p1418_p4)
}
   0xe   :  { %s1553_s12 = smov 256   ;;  %s1554_s13 = smov 16  }
   0xf   :  { %40 = dma.hbm_to_vmem [thread:$0]  %s1663_s1, 1536, %s35_s10, [#allocation6], %s1553_s12, %s1553_s12, %s1554_s13  }
  0x10   :  { %s1555_s16 = smov [#allocation8]  }
  0x11   :  { %s56_s17 = sshll.u32 %s1555_s16, 4  ;;  %s57_s17 = int_to_ptr.vmem [resolvable:$true] %s56_s17 }
  0x12   :  { %s1430_s18 = scalar_lea.vmem %s57_s17, 8192  ;;  %p1435_p6 = scmp.lt.s32.totalorder %s57_s17, %s57_s17 }
  0x13   :  { %p1431_p5 = scmp.ne.s32.totalorder %s57_s17, %s1430_s18  ;;  %p1436_p7 = scmp.lt.s32.totalorder %s1430_s18, %s1430_s18 }
  0x15   :  { %p1437_p8 = por %p1436_p7, %p1435_p6 }
  0x17   :  { %p1438_p9 = pnand %p1437_p8, %p1431_p5 }
  0x19   :  { %1441 = shalt.err (!%p1438_p9)
}
  0x1a   :  { %s1556_s19 = smov 128   ;;  %s1557_s20 = smov 8  }
  0x1b   :  { %62 = dma.hbm_to_vmem [thread:$0]  %s1665_s3, 8192, %s57_s17, [#allocation9], %s1556_s19, %s1556_s19, %s1557_s20  }
  0x1c   :  { %s1558_s23 = smov [#allocation2]   ;;  %s1559_s25 = smov [#allocation7]  }
  0x1d   :  { %s25_s24 = sshll.u32 %s1558_s23, 4  ;;  %s47_s1 = sshll.u32 %s1559_s25, 4  ;;  %s26_s24 = int_to_ptr.vmem [resolvable:$true] %s25_s24  ;;  %s48_s1 = int_to_ptr.vmem [resolvable:$true] %s47_s1 }
  0x1e   :  { %s1450_s26 = scalar_lea.vmem %s26_s24, 64  ;;  %p1455_p11 = scmp.lt.s32.totalorder %s26_s24, %s26_s24 }
  0x1f   :  { %p1451_p10 = scmp.ne.s32.totalorder %s26_s24, %s1450_s26  ;;  %p1456_p12 = scmp.lt.s32.totalorder %s1450_s26, %s1450_s26 }
  0x21   :  { %p1457_p13 = por %p1456_p12, %p1455_p11 }
  0x23   :  { %p1458_p0 = pnand %p1457_p13, %p1451_p10 }
  0x25   :  { %1461 = shalt.err (!%p1458_p0)
}
  0x26   :  { %28 = dma.hbm_to_vmem [thread:$0]  %s1662_s0, 64, %s26_s24, [#allocation3]  }
  0x27   :  { %s1470_s29 = scalar_lea.vmem %s48_s1, 64  ;;  %p1475_p2 = scmp.lt.s32.totalorder %s48_s1, %s48_s1 }
  0x28   :  { %p1471_p1 = scmp.ne.s32.totalorder %s48_s1, %s1470_s29  ;;  %p1476_p3 = scmp.lt.s32.totalorder %s1470_s29, %s1470_s29 }
  0x2a   :  { %p1477_p4 = por %p1476_p3, %p1475_p2 }
  0x2c   :  { %p1478_p5 = pnand %p1477_p4, %p1471_p1 }
  0x2e   :  { %1481 = shalt.err (!%p1478_p5)
}
  0x2f   :  { %50 = dma.hbm_to_vmem [thread:$0]  %s1664_s2, 64, %s48_s1, [#allocation6]  }
  0x30   :  { %s1560_s10 = smov [#allocation10]  }
  0x31   :  { %s70_s11 = sshll.u32 %s1560_s10, 4  ;;  %s71_s11 = int_to_ptr.vmem [resolvable:$true] %s70_s11 }
  0x32   :  { %s1490_s12 = scalar_lea.vmem %s71_s11, 2048  ;;  %p1495_p7 = scmp.lt.s32.totalorder %s71_s11, %s71_s11 }
  0x33   :  { %p1491_p6 = scmp.ne.s32.totalorder %s71_s11, %s1490_s12  ;;  %p1496_p8 = scmp.lt.s32.totalorder %s1490_s12, %s1490_s12 }
  0x35   :  { %p1497_p9 = por %p1496_p8, %p1495_p7 }
  0x37   :  { %p1498_p10 = pnand %p1497_p9, %p1491_p6 }
  0x39   :  { %1501 = shalt.err (!%p1498_p10)
}
  0x3a   :  { %s1561_s0 = smov 64   ;;  %s1562_s13 = smov 4  }
  0x3b   :  { %76 = dma.hbm_to_vmem [thread:$0]  %s1667_s5, 2048, %s71_s11, [#allocation9], %s1561_s0, %s1561_s0, %s1562_s13  }
  0x3c   :  { %s1563_s16 = smov [#allocation11]  }
  0x3d   :  { %s84_s17 = sshll.u32 %s1563_s16, 4  ;;  %s85_s17 = int_to_ptr.vmem [resolvable:$true] %s84_s17 }
  0x3e   :  { %s1510_s2 = scalar_lea.vmem %s85_s17, 1024  ;;  %p1515_p12 = scmp.lt.s32.totalorder %s85_s17, %s85_s17 }
  0x3f   :  { %p1511_p11 = scmp.ne.s32.totalorder %s85_s17, %s1510_s2  ;;  %p1516_p13 = scmp.lt.s32.totalorder %s1510_s2, %s1510_s2 }
  0x41   :  { %p1517_p0 = por %p1516_p13, %p1515_p12 }
  0x43   :  { %p1518_p1 = pnand %p1517_p0, %p1511_p11 }
  0x45   :  { %1521 = shalt.err (!%p1518_p1)
}
  0x46   :  { %90 = dma.hbm_to_vmem [thread:$0]  %s1669_s7, 1024, %s85_s17, [#allocation12], %s1561_s0, %s1561_s0, %s1562_s13  }
  0x47   :  { %1542 = dma.done.wait [#allocation3], 64  }
  0x48   :  { %1543 = vsyncadd [#allocation3], 4294967232 }
  0x49   :  { %1544 = dma.done.wait [#allocation6], 1600  }
  0x4a   :  { %1545 = vsyncadd [#allocation6], 4294965696 }
  0x4b   :  { %1546 = dma.done.wait [#allocation9], 10240  }
  0x4c   :  { %1547 = vsyncadd [#allocation9], 4294957056 }
  0x4d   :  { %1548 = dma.done.wait [#allocation12], 1024  }
  0x4e   :  { %1549 = vsyncadd [#allocation12], 4294966272  ;;  %v1564_v0 = vmov 0   ;;  %v1262_v1 = vld [vmem:[#allocation5 + $0x44] ss:$16 sps:$4 sm:$0xff]   ;;  %vm207_vm0 = vcmask 392192  }
  0x4f   :  { %243 = vmatprep.mubr.bf16.mxu0 %v1564_v0  ;;  %284 = vmatprep.mubr.bf16.mxu1 %v1564_v0  ;;  %v1264_v2 = vld [vmem:[#allocation5 + $0x4c] ss:$16 sps:$4 sm:$0xff]   ;;  %v1266_v3 = vld [vmem:[#allocation5 + $0x40] ss:$16 sps:$4 sm:$0xff]   ;;  %v1267_v4 = vld [vmem:[#allocation5 + $0x48] ss:$16 sps:$4 sm:$0xff]  }
  0x50   :  { %221 = vmatprep.subr.bf16.mxu0 %v1262_v1  ;;  %262 = vmatprep.subr.bf16.mxu1 %v1264_v2  ;;  %v1268_v5 = vld [vmem:[#allocation5 + $0x24] ss:$16 sps:$4 sm:$0xff]   ;;  %v1270_v6 = vld [vmem:[#allocation5 + $0x2c] ss:$16 sps:$4 sm:$0xff]   ;;  %v1272_v7 = vld [vmem:[#allocation5 + $0x20] ss:$16 sps:$4 sm:$0xff]  }
  0x51   :  { %222 = vmatpush1.bf16.msra.mxu0 %v1266_v3  ;;  %263 = vmatpush1.bf16.msra.mxu1 %v1267_v4  ;;  %v1273_v8 = vld [vmem:[#allocation5 + $0x28] ss:$16 sps:$4 sm:$0xff]   ;;  %v1274_v9 = vld [vmem:[#allocation5 + $0x4] ss:$16 sps:$4 sm:$0xff]   ;;  %v1276_v10 = vld [vmem:[#allocation5 + $0xc] ss:$16 sps:$4 sm:$0xff]  }
  0x52   :  { %223 = vmatprep.subr.bf16.mxu0 %v1268_v5  ;;  %264 = vmatprep.subr.bf16.mxu1 %v1270_v6  ;;  %v1278_v11 = vld [vmem:[#allocation5] ss:$16 sps:$4 sm:$0xff]   ;;  %v1279_v12 = vld [vmem:[#allocation5 + $0x8] ss:$16 sps:$4 sm:$0xff]   ;;  %v112_v14 = vld [vmem:[#allocation2] sm:$0xf] }
  0x53   :  { %v1282_v13 = vld [vmem:[#allocation8 + $0x74] ss:$8 sps:$4 sm:$0xff]   ;;  %v1280_v16 = vld [vmem:[#allocation8 + $0x70] ss:$8 sps:$4 sm:$0xff]   ;;  %v1288_v18 = vld [vmem:[#allocation8 + $0x64] ss:$8 sps:$4 sm:$0xff]  }
  0x54   :  { %v1285_v15 = vld [vmem:[#allocation8 + $0x174] ss:$8 sps:$4 sm:$0xff]   ;;  %v1283_v17 = vld [vmem:[#allocation8 + $0x170] ss:$8 sps:$4 sm:$0xff]   ;;  %v1291_v19 = vld [vmem:[#allocation8 + $0x164] ss:$8 sps:$4 sm:$0xff]  }
  0x55   :  { %224 = vmatpush1.bf16.msra.mxu0 %v1272_v7  ;;  %265 = vmatpush1.bf16.msra.mxu1 %v1273_v8  ;;  %v1286_v20 = vld [vmem:[#allocation8 + $0x60] ss:$8 sps:$4 sm:$0xff]   ;;  %v1294_v22 = vld [vmem:[#allocation8 + $0x54] ss:$8 sps:$4 sm:$0xff]   ;;  %v1292_v24 = vld [vmem:[#allocation8 + $0x50] ss:$8 sps:$4 sm:$0xff]  }
  0x56   :  { %225 = vmatprep.subr.bf16.mxu0 %v1274_v9  ;;  %266 = vmatprep.subr.bf16.mxu1 %v1276_v10  ;;  %v1289_v21 = vld [vmem:[#allocation8 + $0x160] ss:$8 sps:$4 sm:$0xff]   ;;  %v1297_v23 = vld [vmem:[#allocation8 + $0x154] ss:$8 sps:$4 sm:$0xff]   ;;  %v1295_v25 = vld [vmem:[#allocation8 + $0x150] ss:$8 sps:$4 sm:$0xff]  }
  0x57   :  { %v1300_v26 = vld [vmem:[#allocation8 + $0x44] ss:$8 sps:$4 sm:$0xff]   ;;  %v1298_v28 = vld [vmem:[#allocation8 + $0x40] ss:$8 sps:$4 sm:$0xff]   ;;  %v1306_v30 = vld [vmem:[#allocation8 + $0x34] ss:$8 sps:$4 sm:$0xff]  }
  0x58   :  { %v1303_v27 = vld [vmem:[#allocation8 + $0x144] ss:$8 sps:$4 sm:$0xff]   ;;  %v1301_v29 = vld [vmem:[#allocation8 + $0x140] ss:$8 sps:$4 sm:$0xff]   ;;  %v1309_v31 = vld [vmem:[#allocation8 + $0x134] ss:$8 sps:$4 sm:$0xff]  }
  0x59   :  { %226 = vmatpush1.bf16.msra.mxu0 %v1278_v11  ;;  %267 = vmatpush1.bf16.msra.mxu1 %v1279_v12  ;;  %v1304_v32 = vld [vmem:[#allocation8 + $0x30] ss:$8 sps:$4 sm:$0xff]   ;;  %v1312_v34 = vld [vmem:[#allocation8 + $0x24] ss:$8 sps:$4 sm:$0xff]   ;;  %v1310_v36 = vld [vmem:[#allocation8 + $0x20] ss:$8 sps:$4 sm:$0xff]  }
  0x5a   :  { %697 = vmatprep.subr.bf16.mxu0 %v1282_v13  ;;  %738 = vmatprep.subr.bf16.mxu1 %v1285_v15  ;;  %v1307_v33 = vld [vmem:[#allocation8 + $0x130] ss:$8 sps:$4 sm:$0xff]   ;;  %v1315_v35 = vld [vmem:[#allocation8 + $0x124] ss:$8 sps:$4 sm:$0xff]   ;;  %v1313_v37 = vld [vmem:[#allocation8 + $0x120] ss:$8 sps:$4 sm:$0xff]   ;;  %v127_v15 = vlaneseq }
  0x5b   :  { %v1318_v38 = vld [vmem:[#allocation8 + $0x14] ss:$8 sps:$4 sm:$0xff]   ;;  %v1316_v40 = vld [vmem:[#allocation8 + $0x10] ss:$8 sps:$4 sm:$0xff]   ;;  %v1324_v42 = vld [vmem:[#allocation8 + $0x4] ss:$8 sps:$4 sm:$0xff]  }
  0x5c   :  { %1103 = vmatmul.mubr.msk.bf16.vlgmr.msra.gmra.mxu0 %vm207_vm0, %v112_v14  ;;  %1104 = vmatmul.mubr.msk.bf16.vlgmr.msra.gmra.mxu1 %vm207_vm0, %v112_v14  ;;  %v1321_v39 = vld [vmem:[#allocation8 + $0x114] ss:$8 sps:$4 sm:$0xff]   ;;  %v1319_v41 = vld [vmem:[#allocation8 + $0x110] ss:$8 sps:$4 sm:$0xff]   ;;  %v1327_v43 = vld [vmem:[#allocation8 + $0x104] ss:$8 sps:$4 sm:$0xff]  }
  0x5d   :  { %698 = vmatpush1.bf16.msra.mxu0 %v1280_v16  ;;  %739 = vmatpush1.bf16.msra.mxu1 %v1283_v17  ;;  %v1322_v44 = vld [vmem:[#allocation8] ss:$8 sps:$4 sm:$0xff]   ;;  %v1330_v46 = vld [vmem:[#allocation8 + $0xf4] ss:$8 sps:$4 sm:$0xff]   ;;  %v1328_v48 = vld [vmem:[#allocation8 + $0xf0] ss:$8 sps:$4 sm:$0xff]  }
  0x5e   :  { %699 = vmatprep.subr.bf16.mxu0 %v1288_v18  ;;  %740 = vmatprep.subr.bf16.mxu1 %v1291_v19  ;;  %v1325_v45 = vld [vmem:[#allocation8 + $0x100] ss:$8 sps:$4 sm:$0xff]   ;;  %v1333_v47 = vld [vmem:[#allocation8 + $0x1f4] ss:$8 sps:$4 sm:$0xff]   ;;  %v1331_v49 = vld [vmem:[#allocation8 + $0x1f0] ss:$8 sps:$4 sm:$0xff]  }
  0x5f   :  { %v1336_v50 = vld [vmem:[#allocation8 + $0xe4] ss:$8 sps:$4 sm:$0xff]   ;;  %v1334_v52 = vld [vmem:[#allocation8 + $0xe0] ss:$8 sps:$4 sm:$0xff]   ;;  %v1342_v54 = vld [vmem:[#allocation8 + $0xd4] ss:$8 sps:$4 sm:$0xff]  }
  0x60   :  { %v1339_v51 = vld [vmem:[#allocation8 + $0x1e4] ss:$8 sps:$4 sm:$0xff]   ;;  %v1337_v53 = vld [vmem:[#allocation8 + $0x1e0] ss:$8 sps:$4 sm:$0xff]   ;;  %v1345_v55 = vld [vmem:[#allocation8 + $0x1d4] ss:$8 sps:$4 sm:$0xff]  }
  0x61   :  { %700 = vmatpush1.bf16.msra.mxu0 %v1286_v20  ;;  %741 = vmatpush1.bf16.msra.mxu1 %v1289_v21  ;;  %v1340_v56 = vld [vmem:[#allocation8 + $0xd0] ss:$8 sps:$4 sm:$0xff]   ;;  %v1348_v58 = vld [vmem:[#allocation8 + $0xc4] ss:$8 sps:$4 sm:$0xff]   ;;  %v1346_v60 = vld [vmem:[#allocation8 + $0xc0] ss:$8 sps:$4 sm:$0xff]  }
  0x62   :  { %701 = vmatprep.subr.bf16.mxu0 %v1294_v22  ;;  %742 = vmatprep.subr.bf16.mxu1 %v1297_v23  ;;  %v1343_v57 = vld [vmem:[#allocation8 + $0x1d0] ss:$8 sps:$4 sm:$0xff]   ;;  %v1351_v59 = vld [vmem:[#allocation8 + $0x1c4] ss:$8 sps:$4 sm:$0xff]   ;;  %v1349_v61 = vld [vmem:[#allocation8 + $0x1c0] ss:$8 sps:$4 sm:$0xff]  }
  0x63   :  { %v1354_v62 = vld [vmem:[#allocation8 + $0xb4] ss:$8 sps:$4 sm:$0xff]   ;;  %v1352_v0 = vld [vmem:[#allocation8 + $0xb0] ss:$8 sps:$4 sm:$0xff]   ;;  %v1360_v2 = vld [vmem:[#allocation8 + $0xa4] ss:$8 sps:$4 sm:$0xff]  }
  0x64   :  { %v1357_v63 = vld [vmem:[#allocation8 + $0x1b4] ss:$8 sps:$4 sm:$0xff]   ;;  %v1355_v1 = vld [vmem:[#allocation8 + $0x1b0] ss:$8 sps:$4 sm:$0xff]   ;;  %v1363_v3 = vld [vmem:[#allocation8 + $0x1a4] ss:$8 sps:$4 sm:$0xff]  }
  0x65   :  { %702 = vmatpush1.bf16.msra.mxu0 %v1292_v24  ;;  %743 = vmatpush1.bf16.msra.mxu1 %v1295_v25  ;;  %v1358_v4 = vld [vmem:[#allocation8 + $0xa0] ss:$8 sps:$4 sm:$0xff]   ;;  %v1366_v6 = vld [vmem:[#allocation8 + $0x94] ss:$8 sps:$4 sm:$0xff]   ;;  %v1364_v8 = vld [vmem:[#allocation8 + $0x90] ss:$8 sps:$4 sm:$0xff]  }
  0x66   :  { %703 = vmatprep.subr.bf16.mxu0 %v1300_v26  ;;  %744 = vmatprep.subr.bf16.mxu1 %v1303_v27  ;;  %v1361_v5 = vld [vmem:[#allocation8 + $0x1a0] ss:$8 sps:$4 sm:$0xff]   ;;  %v1369_v7 = vld [vmem:[#allocation8 + $0x194] ss:$8 sps:$4 sm:$0xff]   ;;  %v1367_v9 = vld [vmem:[#allocation8 + $0x190] ss:$8 sps:$4 sm:$0xff]  }
  0x67   :  { %v1372_v10 = vld [vmem:[#allocation8 + $0x84] ss:$8 sps:$4 sm:$0xff]   ;;  %v1370_v12 = vld [vmem:[#allocation8 + $0x80] ss:$8 sps:$4 sm:$0xff]   ;;  %v1376_v14 = vld [vmem:[#allocation10 + $0x78] sm:$0xff]   ;;  %v1636_v16 = vshrl.u32 %v127_v15, 7 }
  0x68   :  { %v1375_v11 = vld [vmem:[#allocation8 + $0x184] ss:$8 sps:$4 sm:$0xff]   ;;  %v1373_v13 = vld [vmem:[#allocation8 + $0x180] ss:$8 sps:$4 sm:$0xff]   ;;  %v125_v19 = vld [vmem:[#allocation7] sm:$0xf] }
  0x69   :  { %704 = vmatpush1.bf16.msra.mxu0 %v1298_v28  ;;  %745 = vmatpush1.bf16.msra.mxu1 %v1301_v29  ;;  %v129_v17 = vsub.s32 0, %v1636_v16  ;;  %v137_v18 = vsub.s32 2, %v1636_v16  ;;  %v133_v20 = vsub.s32 1, %v1636_v16  ;;  %v141_v21 = vsub.s32 3, %v1636_v16  ;;  %v1397_v16 = vld [vmem:[#allocation11 + $0x10] sm:$0xff]   ;;  %s1567_s23 = smov [#allocation13]  }
  0x6a   :  { %705 = vmatprep.subr.bf16.mxu0 %v1306_v30  ;;  %746 = vmatprep.subr.bf16.mxu1 %v1309_v31  ;;  %vm1566_vm1 = vmmov 0  }
  0x6b   :  { %v130_v22 = vrot.slane %v125_v19, %v129_v17  ;;  %v138_v23 = vrot.slane %v125_v19, %v137_v18  ;;  %v134_v24 = vrot.slane %v125_v19, %v133_v20  ;;  %v142_v25 = vrot.slane %v125_v19, %v141_v21 }
  0x6d   :  { %706 = vmatpush1.bf16.msra.mxu0 %v1304_v32  ;;  %747 = vmatpush1.bf16.msra.mxu1 %v1307_v33 }
  0x6e   :  { %707 = vmatprep.subr.bf16.mxu0 %v1312_v34  ;;  %748 = vmatprep.subr.bf16.mxu1 %v1315_v35 }
  0x71   :  { %708 = vmatpush1.bf16.msra.mxu0 %v1310_v36  ;;  %749 = vmatpush1.bf16.msra.mxu1 %v1313_v37 }
  0x72   :  { %709 = vmatprep.subr.bf16.mxu0 %v1318_v38  ;;  %750 = vmatprep.subr.bf16.mxu1 %v1321_v39 }
  0x75   :  { %710 = vmatpush1.bf16.msra.mxu0 %v1316_v40  ;;  %751 = vmatpush1.bf16.msra.mxu1 %v1319_v41 }
  0x76   :  { %711 = vmatprep.subr.bf16.mxu0 %v1324_v42  ;;  %752 = vmatprep.subr.bf16.mxu1 %v1327_v43 }
  0x79   :  { %712 = vmatpush1.bf16.msra.mxu0 %v1322_v44  ;;  %753 = vmatpush1.bf16.msra.mxu1 %v1325_v45  ;;  %v1377_v45 = vld [vmem:[#allocation10 + $0x38] sm:$0xff]  }
  0x7a   :  { %713 = vmatprep.subr.bf16.mxu0 %v1330_v46  ;;  %754 = vmatprep.subr.bf16.mxu1 %v1333_v47  ;;  %v1378_v47 = vld [vmem:[#allocation10 + $0x70] sm:$0xff]  }
  0x7d   :  { %714 = vmatpush2.bf16.msra.mxu0 %v1328_v48  ;;  %755 = vmatpush2.bf16.msra.mxu1 %v1331_v49  ;;  %v1379_v48 = vld [vmem:[#allocation10 + $0x30] sm:$0xff]   ;;  %v1380_v49 = vld [vmem:[#allocation10 + $0x68] sm:$0xff]  }
  0x7e   :  { %715 = vmatprep.subr.bf16.mxu0 %v1336_v50  ;;  %756 = vmatprep.subr.bf16.mxu1 %v1339_v51  ;;  %v1381_v50 = vld [vmem:[#allocation10 + $0x28] sm:$0xff]   ;;  %v1382_v51 = vld [vmem:[#allocation10 + $0x60] sm:$0xff]  }
  0x81   :  { %716 = vmatpush2.bf16.msra.mxu0 %v1334_v52  ;;  %757 = vmatpush2.bf16.msra.mxu1 %v1337_v53  ;;  %v1383_v52 = vld [vmem:[#allocation10 + $0x20] sm:$0xff]   ;;  %v1384_v53 = vld [vmem:[#allocation10 + $0x58] sm:$0xff]  }
  0x82   :  { %717 = vmatprep.subr.bf16.mxu0 %v1342_v54  ;;  %758 = vmatprep.subr.bf16.mxu1 %v1345_v55  ;;  %v1385_v54 = vld [vmem:[#allocation10 + $0x18] sm:$0xff]   ;;  %v1386_v55 = vld [vmem:[#allocation10 + $0x50] sm:$0xff]  }
  0x85   :  { %718 = vmatpush2.bf16.msra.mxu0 %v1340_v56  ;;  %759 = vmatpush2.bf16.msra.mxu1 %v1343_v57  ;;  %v1387_v56 = vld [vmem:[#allocation10 + $0x10] sm:$0xff]   ;;  %v1388_v57 = vld [vmem:[#allocation10 + $0x48] sm:$0xff]  }
  0x86   :  { %719 = vmatprep.subr.bf16.mxu0 %v1348_v58  ;;  %760 = vmatprep.subr.bf16.mxu1 %v1351_v59  ;;  %v1389_v58 = vld [vmem:[#allocation10 + $0x8] sm:$0xff]   ;;  %v1390_v59 = vld [vmem:[#allocation10 + $0x40] sm:$0xff]  }
  0x89   :  { %720 = vmatpush2.bf16.msra.mxu0 %v1346_v60  ;;  %761 = vmatpush2.bf16.msra.mxu1 %v1349_v61  ;;  %v1391_v60 = vld [vmem:[#allocation10] sm:$0xff]   ;;  %v1392_v61 = vld [vmem:[#allocation11 + $0x38] sm:$0xff]  }
  0x8a   :  { %721 = vmatprep.subr.bf16.mxu0 %v1354_v62  ;;  %762 = vmatprep.subr.bf16.mxu1 %v1357_v63  ;;  %v1565_v62 = vmov 0.0   ;;  %v1393_v63 = vld [vmem:[#allocation11 + $0x30] sm:$0xff]  }
  0x8d   :  { %722 = vmatpush2.bf16.msra.mxu0 %v1352_v0  ;;  %763 = vmatpush2.bf16.msra.mxu1 %v1355_v1  ;;  %v1394_v0 = vld [vmem:[#allocation11 + $0x28] sm:$0xff]   ;;  %v1395_v1 = vld [vmem:[#allocation11 + $0x20] sm:$0xff]  }
  0x8e   :  { %723 = vmatprep.subr.bf16.mxu0 %v1360_v2  ;;  %764 = vmatprep.subr.bf16.mxu1 %v1363_v3  ;;  %v1396_v2 = vld [vmem:[#allocation11 + $0x18] sm:$0xff]  }
  0x8f   :  { %v365_v3 = vld [vmem:[%s1666_s4] sm:$0x3] }
  0x91   :  { %724 = vmatpush2.bf16.msra.mxu0 %v1358_v4  ;;  %765 = vmatpush2.bf16.msra.mxu1 %v1361_v5  ;;  %v370_v4 = vrot.slane %v365_v3, %v129_v17  ;;  %v374_v5 = vrot.slane %v365_v3, %v133_v20  ;;  %v1398_v17 = vld [vmem:[#allocation11 + $0x8] sm:$0xff]   ;;  %v1399_v20 = vld [vmem:[#allocation11] sm:$0xff]  }
  0x92   :  { %725 = vmatprep.subr.bf16.mxu0 %v1366_v6  ;;  %766 = vmatprep.subr.bf16.mxu1 %v1369_v7 }
  0x95   :  { %726 = vmatpush2.bf16.msra.mxu0 %v1364_v8  ;;  %767 = vmatpush2.bf16.msra.mxu1 %v1367_v9 }
  0x96   :  { %727 = vmatprep.subr.bf16.mxu0 %v1372_v10  ;;  %768 = vmatprep.subr.bf16.mxu1 %v1375_v11 }
  0x99   :  { %728 = vmatpush2.bf16.msra.mxu0 %v1370_v12  ;;  %769 = vmatpush2.bf16.msra.mxu1 %v1373_v13 }
  0x9a   :  { %1195 = vmatprep.subr.bf16.mxu0 %v1376_v14  ;;  %1226 = vmatprep.subr.bf16.mxu1 %v1565_v62 }
 0x11c   :  { %v245_v26 = vpop.f32.mrf.mxu0  ;;  %v286_v27 = vpop.f32.mrf.mxu1 }
 0x11d   :  { %v246_v28 = vadd.f32 %v245_v26, %v130_v22  ;;  %v287_v29 = vadd.f32 %v286_v27, %v138_v23  ;;  %v1169_v26 = vld [vmem:[%s1668_s6] ss:$0 sm:$0xff]  ;;  %s1079_s6 = sshll.u32 %s1567_s23, 4  ;;  %s1080_s6 = int_to_ptr.vmem [resolvable:$true] %s1079_s6 }
 0x11e   :  { %v247_v30 = vpop.f32.mrf.mxu0  ;;  %v288_v31 = vpop.f32.mrf.mxu1  ;;  %s1522_s24 = scalar_lea.vmem %s1080_s6, 128  ;;  %p1527_p3 = scmp.lt.s32.totalorder %s1080_s6, %s1080_s6 }
 0x11f   :  { %v295_v32 = vmax.f32 %v287_v29, 0.0  ;;  %v248_v33 = vadd.f32 %v247_v30, %v134_v24  ;;  %v289_v34 = vadd.f32 %v288_v31, %v142_v25  ;;  %v293_v35 = vmax.f32 %v246_v28, 0.0  ;;  %p1523_p2 = scmp.ne.s32.totalorder %s1080_s6, %s1522_s24  ;;  %p1528_p4 = scmp.lt.s32.totalorder %s1522_s24, %s1522_s24 }
 0x120   :  { %v249_v36 = vpop.f32.mrf.mxu0  ;;  %v290_v37 = vpop.f32.mrf.mxu1 }
 0x121   :  { %v294_v38 = vmax.f32 %v248_v33, 0.0  ;;  %v296_v39 = vmax.f32 %v289_v34, 0.0  ;;  %v299_v40 = vpack.c.bf16 %v295_v32, %v295_v32  ;;  %v297_v46 = vpack.c.bf16 %v293_v35, %v293_v35  ;;  %v1186_v34 = vld [vmem:[%s1670_s8] ss:$0 sm:$0xff]  ;;  %p1529_p5 = por %p1528_p4, %p1527_p3 }
 0x122   :  { %v250_v41 = vpop.f32.mrf.mxu0  ;;  %v291_v42 = vpop.f32.mrf.mxu1 }
 0x123   :  { %v298_v43 = vpack.c.bf16 %v294_v38, %v294_v38  ;;  %v300_v44 = vpack.c.bf16 %v296_v39, %v296_v39  ;;  %p1530_p6 = pnand %p1529_p5, %p1523_p2 }
 0x125   :  { %729 = vmatprep.mubr.bf16.mxu0 %v298_v43  ;;  %770 = vmatprep.mubr.bf16.mxu1 %v300_v44 }
 0x126   :  { %730 = vmatmul.mubr.bf16.vlgmr.msra.gmra.mxu0 %v297_v46  ;;  %771 = vmatmul.mubr.bf16.vlgmr.msra.gmra.mxu1 %v299_v40 }
 0x127   :  { %1196 = vmatpush3.bf16.msra.mxu0 %v1377_v45  ;;  %1227 = vmatpush3.bf16.msra.mxu1 %v1392_v61 }
 0x128   :  { %1197 = vmatprep.subr.bf16.mxu0 %v1378_v47  ;;  %1228 = vmatprep.subr.bf16.mxu1 %v1565_v62 }
 0x129   :  { %1242 = vmatprep.mubr.msk.bf16.mxu1 %vm1566_vm1, %v1565_v62 }
 0x12b   :  { %1198 = vmatpush3.bf16.msra.mxu0 %v1379_v48  ;;  %1229 = vmatpush3.bf16.msra.mxu1 %v1393_v63 }
 0x12c   :  { %1199 = vmatprep.subr.bf16.mxu0 %v1380_v49  ;;  %1230 = vmatprep.subr.bf16.mxu1 %v1565_v62 }
 0x12f   :  { %1200 = vmatpush3.bf16.msra.mxu0 %v1381_v50  ;;  %1231 = vmatpush3.bf16.msra.mxu1 %v1394_v0 }
 0x130   :  { %1201 = vmatprep.subr.bf16.mxu0 %v1382_v51  ;;  %1232 = vmatprep.subr.bf16.mxu1 %v1565_v62 }
 0x133   :  { %1202 = vmatpush3.bf16.msra.mxu0 %v1383_v52  ;;  %1233 = vmatpush3.bf16.msra.mxu1 %v1395_v1 }
 0x134   :  { %1203 = vmatprep.subr.bf16.mxu0 %v1384_v53  ;;  %1234 = vmatprep.subr.bf16.mxu1 %v1565_v62 }
 0x137   :  { %1204 = vmatpush3.bf16.msra.mxu0 %v1385_v54  ;;  %1235 = vmatpush3.bf16.msra.mxu1 %v1396_v2 }
 0x138   :  { %1205 = vmatprep.subr.bf16.mxu0 %v1386_v55  ;;  %1236 = vmatprep.subr.bf16.mxu1 %v1565_v62 }
 0x13b   :  { %1206 = vmatpush3.bf16.msra.mxu0 %v1387_v56  ;;  %1237 = vmatpush3.bf16.msra.mxu1 %v1397_v16 }
 0x13c   :  { %1207 = vmatprep.subr.bf16.mxu0 %v1388_v57  ;;  %1238 = vmatprep.subr.bf16.mxu1 %v1565_v62 }
 0x13f   :  { %1208 = vmatpush3.bf16.msra.mxu0 %v1389_v58  ;;  %1239 = vmatpush3.bf16.msra.mxu1 %v1398_v17 }
 0x140   :  { %1209 = vmatprep.subr.bf16.mxu0 %v1390_v59  ;;  %1240 = vmatprep.subr.bf16.mxu1 %v1565_v62 }
 0x143   :  { %1210 = vmatpush3.bf16.msra.mxu0 %v1391_v60  ;;  %1241 = vmatpush3.bf16.msra.mxu1 %v1399_v20 }
 0x1e6   :  { %v731_v6 = vpop.f32.mrf.mxu0  ;;  %v772_v7 = vpop.f32.mrf.mxu1 }
 0x1e7   :  { %v732_v8 = vadd.f32 %v731_v6, %v370_v4 }
 0x1e8   :  { %v733_v9 = vpop.f32.mrf.mxu0  ;;  %v774_v10 = vpop.f32.mrf.mxu1 }
 0x1e9   :  { %v773_v11 = vadd.f32 %v772_v7, %v732_v8  ;;  %v734_v12 = vadd.f32 %v733_v9, %v374_v5 }
 0x1ea   :  { %v735_v13 = vpop.f32.mrf.mxu0  ;;  %v776_v14 = vpop.f32.mrf.mxu1 }
 0x1eb   :  { %v775_v15 = vadd.f32 %v774_v10, %v734_v12  ;;  %v779_v18 = vmax.f32 %v773_v11, 0.0 }
 0x1ec   :  { %v736_v19 = vpop.f32.mrf.mxu0  ;;  %v777_v21 = vpop.f32.mrf.mxu1 }
 0x1ed   :  { %v780_v22 = vmax.f32 %v775_v15, 0.0  ;;  %v781_v24 = vpack.c.bf16 %v779_v18, %v779_v18 }
 0x1ef   :  { %v782_v23 = vpack.c.bf16 %v780_v22, %v780_v22 }
 0x1f1   :  { %950 = vmatprep.mubr.bf16.mxu0 %v782_v23 }
 0x1f2   :  { %951 = vmatmul.mubr.bf16.vlgmr.msra.gmra.mxu0 %v781_v24 }
 0x2b2   :  { %v1211_v25 = vpop.f32.mrf.mxu0 }
 0x2b4   :  { %v1212_v27 = vpop.f32.mrf.mxu0 }
 0x2b5   :  { %v1213_v28 = vadd.f32 %v1212_v27, %v1211_v25 }
 0x2b6   :  { %v1214_v29 = vpop.f32.mrf.mxu0 }
 0x2b7   :  { %v953_v30 = vadd.f32 %v1213_v28, %v1169_v26 }
 0x2b8   :  { %v1215_v31 = vpop.f32.mrf.mxu0 }
 0x2b9   :  { %v958_v32 = vmax.f32 %v953_v30, 0.0 }
 0x2bb   :  { %v959_v33 = vpack.c.bf16 %v958_v32, %v958_v32 }
 0x2bd   :  { %1243 = vmatmul.mubr.bf16.vlgmr.msra.gmra.mxu1 %v959_v33 }
 0x37d   :  { %v1065_v35 = vpop.f32.mrf.mxu1 }
 0x37e   :  { %v1066_v36 = vadd.f32 %v1186_v34, %v1065_v35 }
 0x37f   :  { %v1244_v37 = vpop.f32.mrf.mxu1 }
 0x380   :  { %1400 = vtanh.f32 %v1066_v36 }
 0x381   :  { %v1068_v38 = vpop.f32.mrf.mxu1 }
 0x383   :  { %v1245_v39 = vpop.f32.mrf.mxu1 }
 0x38d   :  { %v1401_v40 = vpop.eup %1400 }
 0x38e   :  { %1072 = vst [vmem:[#allocation13] sm:$0xff] %v1401_v40 }
 0x38f   :  { %1533 = shalt.err (!%p1530_p6)
}
 0x390   :  { %1082 = dma.vmem_to_hbm [thread:$0]  %s1080_s6, 128, %s1671_s9, [#allocation4]  }
 0x391   :  { %1550 = dma.done.wait [#allocation4], 128  }
 0x392   :  { %1551 = vsyncadd [#allocation4], 4294967168 }
 0x393   :  { %1086 = vsyncpa [#allocation3], 1 }
 0x394   :  { %1087 = vsyncpa [#allocation6], 1 }
 0x395   :  { %1088 = vsyncpa [#allocation9], 1 }
 0x396   :  { %1089 = vsyncpa [#allocation12], 1 }
 0x397   :  { %1090 = vsyncpa [#allocation4], 1 }

</bundles_post_ra>
